<compile_context>
chip_gen: v6e
topology: v6e:2x2x1
jax: 0.10.0
libtpu: 0.0.40
codegen_flags: <defaults>
</compile_context>

<pallas_src>
import functools

import jax
import jax.numpy as jnp
from jax.experimental import pallas as pl
from jax.experimental.pallas import tpu as pltpu


def _round_up(x, m):
    return (x + m - 1) // m * m


def _cross_instance_kernel(x_ref, w0_ref, b0_ref, w1_ref, b1_ref,
                           whT_ref, bhT_ref, out_ref, *, num_actions):
    """One row-tile of the forward pass; emits a transposed compact slab.

    out_ref is (OUT_ROWS, tm): rows [0, A) = policy logits, row A = baseline,
    row A+1 = argmax action (as f32), remaining rows = zero padding.  Lanes
    are the batch rows, so every store is an unmasked 128-lane store.
    """
    x = x_ref[...]                                              # (tm, D)

    # fc_0 + ReLU  (MXU in weight dtype; f32 accumulate / bias / ReLU).
    h0 = jnp.dot(x, w0_ref[...], preferred_element_type=jnp.float32)
    h0 = jnp.maximum(h0 + b0_ref[...], 0.0)                     # (tm, H) f32

    # fc_1 + ReLU
    h1 = jnp.dot(h0.astype(w1_ref.dtype), w1_ref[...],
                 preferred_element_type=jnp.float32)
    h1 = jnp.maximum(h1 + b1_ref[...], 0.0)                     # (tm, H) f32

    # Fused policy + baseline head, computed directly in the transposed
    # orientation: headT[c, r] = sum_k whT[c, k] * h1[r, k]  (== whT @ h1.T).
    # The rhs-transposed contraction rides on the MXU/XLU which have slack.
    headT = jax.lax.dot_general(
        whT_ref[...], h1.astype(whT_ref.dtype),
        dimension_numbers=(((1,), (1,)), ((), ())),
        preferred_element_type=jnp.float32)                     # (OUT_ROWS, tm)
    headT = headT + bhT_ref[...]                                # bias (OUT_ROWS, 1)

    row = jax.lax.broadcasted_iota(jnp.int32, headT.shape, 0)

    # Eval-mode action: argmax over the real logit rows only (padded rows
    # masked to -inf), first-occurrence tie-break to match torch/jnp argmax.
    neg_inf = jnp.float32(-jnp.inf)
    logits_masked = jnp.where(row < num_actions, headT, neg_inf)
    m = jnp.max(logits_masked, axis=0, keepdims=True)           # (1, tm)
    first_max = jnp.min(jnp.where(logits_masked == m, row, num_actions),
                        axis=0, keepdims=True)                  # (1, tm) int32

    # Pack the action (small int, exactly representable in f32) into row A+1.
    out = jnp.where(row == num_actions + 1,
                    first_max.astype(jnp.float32), headT)
    out_ref[...] = out.astype(out_ref.dtype)


def prepare_params(params, mxu_dtype=jnp.bfloat16):
    """Build the fused/transposed head and cast weights ONCE per param set.

    Hoisting this out of the per-call path removes several small XLA kernels
    and HBM round-trips from every forward call (matters most at small T*B).
    """
    D, H = params["w0"].shape
    A = params["wp"].shape[1]
    # Action index is round-tripped through an f32 lane; exact while A < 2^24.
    assert A < (1 << 24)
    out_rows = _round_up(A + 2, 8)          # logits | baseline | action | pad

    whT = jnp.zeros((out_rows, H), jnp.float32)
    whT = whT.at[:A, :].set(params["wp"].T).at[A, :].set(params["wb"][:, 0])
    bhT = jnp.zeros((out_rows, 1), jnp.float32)
    bhT = bhT.at[:A, 0].set(params["bp"][0]).at[A, 0].set(params["bb"][0, 0])

    return dict(
        w0=params["w0"].astype(mxu_dtype),
        b0=params["b0"].astype(jnp.float32),
        w1=params["w1"].astype(mxu_dtype),
        b1=params["b1"].astype(jnp.float32),
        whT=whT.astype(mxu_dtype),
        bhT=bhT,
        state_dim=int(D), hidden=int(H), num_actions=int(A),
        out_rows=int(out_rows), mxu_dtype=mxu_dtype,
    )


def cross_instance_forward(prepared, src_features, *, block_rows=1024):
    """src_features: (T, B, state_dim) f32.  `prepared` = prepare_params(...)."""
    T, B, D = src_features.shape
    assert D == prepared["state_dim"]
    N = T * B
    A = prepared["num_actions"]
    H = prepared["hidden"]
    out_rows = prepared["out_rows"]
    mxu_dtype = prepared["mxu_dtype"]

    # Tile choice: pick the tile count first (>= 2 when N is large enough so
    # both v7x TensorCores participate), then size tm so the last tile is
    # nearly full.  tm is a multiple of 128 so the transposed output block
    # keeps full-lane, unmasked stores.
    tiles = max(pl.cdiv(N, block_rows), 2 if N >= 1024 else 1)
    tm = _round_up(pl.cdiv(N, tiles), 128)
    n_pad = _round_up(N, tm)
    grid_rows = n_pad // tm

    x = src_features.reshape(N, D).astype(mxu_dtype)
    if n_pad != N:
        x = jnp.pad(x, ((0, n_pad - N), (0, 0)))

    w_item = jnp.dtype(mxu_dtype).itemsize
    flops = 2 * n_pad * (D * H + H * H + H * out_rows)
    bytes_accessed = (n_pad * D * w_item                      # activations in
                      + n_pad * out_rows * 4                  # compact slab out
                      + (D * H + H * H + out_rows * H) * w_item
                      + (2 * H + out_rows) * 4)               # biases

    # Per-step VMEM footprint: double-buffered x/out, resident weights,
    # f32 intermediates.  Only raise the scoped limit (16 MiB default on v5e)
    # if a user-chosen huge block_rows actually needs it.
    vmem_est = (2 * tm * D * w_item + 2 * out_rows * tm * 4
                + 2 * ((D * H + H * H + out_rows * H) * w_item
                       + (2 * H + out_rows) * 4)
                + 4 * tm * H * 4)
    vmem_limit = (int(min(2 * vmem_est, 48 * 1024 * 1024))
                  if vmem_est > 12 * 1024 * 1024 else None)

    row_spec = pl.BlockSpec((tm, D), lambda i: (i, 0))
    fixed = lambda shape: pl.BlockSpec(shape, lambda i: (0, 0))

    kernel = pl.pallas_call(
        functools.partial(_cross_instance_kernel, num_actions=A),
        out_shape=jax.ShapeDtypeStruct((out_rows, n_pad), jnp.float32),
        grid=(grid_rows,),
        in_specs=[
            row_spec,                 # x   (tiled over rows)
            fixed((D, H)),            # w0  (VMEM-resident, constant index_map)
            fixed((1, H)),            # b0
            fixed((H, H)),            # w1
            fixed((1, H)),            # b1
            fixed((out_rows, H)),     # fused/transposed head weight
            fixed((out_rows, 1)),     # fused/transposed head bias
        ],
        out_specs=pl.BlockSpec((out_rows, tm), lambda i: (0, i)),
        compiler_params=pltpu.CompilerParams(
            dimension_semantics=("parallel",),
            vmem_limit_bytes=vmem_limit),
        cost_estimate=pl.CostEstimate(
            flops=int(flops), transcendentals=0,
            bytes_accessed=int(bytes_accessed)),
    )

    slab = kernel(x, prepared["w0"], prepared["b0"], prepared["w1"],
                  prepared["b1"], prepared["whT"], prepared["bhT"])

    # Post-kernel slicing touches only the compact (out_rows, n_pad) slab.
    logits = jnp.transpose(slab[:A, :N])                 # (N, A)
    baseline = slab[A, :N]
    action = slab[A + 1, :N].astype(jnp.int32)
    return dict(
        policy_logits=logits.reshape(T, B, A),
        baseline=baseline.reshape(T, B),
        action=action.reshape(T, B),
    )


def init_params(key, state_dim, hidden, num_actions):
    """PyTorch-Linear-style init (uniform +-1/sqrt(fan_in)).

    Weights stored pre-transposed as (in_dim, out_dim); biases as (1, out)."""
    def linear(k, fan_in, fan_out):
        kw, kb = jax.random.split(k)
        bound = 1.0 / jnp.sqrt(fan_in)
        w = jax.random.uniform(kw, (fan_in, fan_out), jnp.float32, -bound, bound)
        b = jax.random.uniform(kb, (1, fan_out), jnp.float32, -bound, bound)
        return w, b

    k0, k1, k2, k3 = jax.random.split(key, 4)
    w0, b0 = linear(k0, state_dim, hidden)
    w1, b1 = linear(k1, hidden, hidden)
    wp, bp = linear(k2, hidden, num_actions)
    wb, bb = linear(k3, hidden, 1)
    return dict(w0=w0, b0=b0, w1=w1, b1=b1, wp=wp, bp=bp, wb=wb, bb=bb)


def _reference_forward(params, src_features):
    T, B, D = src_features.shape
    x = src_features.reshape(T * B, D)
    h0 = jax.nn.relu(x @ params["w0"] + params["b0"])
    h1 = jax.nn.relu(h0 @ params["w1"] + params["b1"])
    logits = h1 @ params["wp"] + params["bp"]
    baseline = h1 @ params["wb"] + params["bb"]
    action = jnp.argmax(logits, axis=1).astype(jnp.int32)
    A = params["wp"].shape[1]
    return dict(policy_logits=logits.reshape(T, B, A),
                baseline=baseline.reshape(T, B),
                action=action.reshape(T, B))


if __name__ == "__main__":
    # Small shapes consistent with the module: state_dim=32, T=4, B=2,
    # hidden=128 (fixed in the module), num_actions=8.
    T, B, STATE_DIM, HIDDEN, NUM_ACTIONS = 4, 2, 32, 128, 8

    key = jax.random.PRNGKey(0)
    k_params, k_x = jax.random.split(key)
    params = init_params(k_params, STATE_DIM, HIDDEN, NUM_ACTIONS)
    src_features = jax.random.normal(k_x, (T, B, STATE_DIM), jnp.float32)

    ref = _reference_forward(params, src_features)

    # f32 MXU operands: tight numerical check against the pure-JAX reference.
    out_f32 = cross_instance_forward(
        prepare_params(params, mxu_dtype=jnp.float32), src_features)
    out_f32 = jax.tree_util.tree_map(jax.block_until_ready, out_f32)
    assert out_f32["policy_logits"].shape == (T, B, NUM_ACTIONS)
    assert out_f32["baseline"].shape == (T, B)
    assert out_f32["action"].shape == (T, B)
    assert jnp.allclose(out_f32["policy_logits"], ref["policy_logits"], atol=1e-5)
    assert jnp.allclose(out_f32["baseline"], ref["baseline"], atol=1e-5)
    assert jnp.array_equal(out_f32["action"], ref["action"])

    # bf16 MXU operands (default fast path): the input features are
    # intentionally quantized to bf16 before the first matmul, so logits /
    # baseline carry bf16 operand error end-to-end -> loose check vs the f32
    # reference plus exact argmax self-consistency on the kernel's own logits.
    out_bf16 = cross_instance_forward(prepare_params(params), src_features)
    out_bf16 = jax.tree_util.tree_map(jax.block_until_ready, out_bf16)
    assert out_bf16["policy_logits"].shape == (T, B, NUM_ACTIONS)
    assert jnp.allclose(out_bf16["policy_logits"], ref["policy_logits"],
                        atol=1e-1, rtol=1e-1)
    assert jnp.allclose(out_bf16["baseline"], ref["baseline"],
                        atol=1e-1, rtol=1e-1)
    assert jnp.array_equal(
        out_bf16["action"],
        jnp.argmax(out_bf16["policy_logits"], axis=-1).astype(jnp.int32))

    print("KERNEL_OK")
</pallas_src>

<mosaic_0001>
module attributes {stable_mosaic.version = 11 : i64} {
  func.func @_cross_instance_kernel(%arg0: i32, %arg1: memref<128x32xf32, #tpu.memory_space<vmem>>, %arg2: memref<32x128xf32, #tpu.memory_space<vmem>>, %arg3: memref<1x128xf32, #tpu.memory_space<vmem>>, %arg4: memref<128x128xf32, #tpu.memory_space<vmem>>, %arg5: memref<1x128xf32, #tpu.memory_space<vmem>>, %arg6: memref<16x128xf32, #tpu.memory_space<vmem>>, %arg7: memref<16x1xf32, #tpu.memory_space<vmem>>, %arg8: memref<16x128xf32, #tpu.memory_space<vmem>>) attributes {dimension_semantics = [#tpu.dimension_semantics<parallel>], iteration_bounds = array<i64: 1>, scalar_prefetch = 0 : i64, scratch_operands = 0 : i64, tpu.core_type = #tpu.core_type<tc>, window_params = [{transform_indices = @transform_0, window_bounds = array<i64: 128, 32>}, {pipeline_mode = #tpu.pipeline_mode<synchronous>, transform_indices = @transform_1, window_bounds = array<i64: 32, 128>}, {pipeline_mode = #tpu.pipeline_mode<synchronous>, transform_indices = @transform_2, window_bounds = array<i64: 1, 128>}, {pipeline_mode = #tpu.pipeline_mode<synchronous>, transform_indices = @transform_3, window_bounds = array<i64: 128, 128>}, {pipeline_mode = #tpu.pipeline_mode<synchronous>, transform_indices = @transform_4, window_bounds = array<i64: 1, 128>}, {pipeline_mode = #tpu.pipeline_mode<synchronous>, transform_indices = @transform_5, window_bounds = array<i64: 16, 128>}, {pipeline_mode = #tpu.pipeline_mode<synchronous>, transform_indices = @transform_6, window_bounds = array<i64: 16, 1>}, {transform_indices = @transform_7, window_bounds = array<i64: 16, 128>}]} {
    %c0 = arith.constant 0 : index
    %c0_0 = arith.constant 0 : index
    %0 = vector.load %arg1[%c0, %c0_0] : memref<128x32xf32, #tpu.memory_space<vmem>>, vector<128x32xf32>
    %c0_1 = arith.constant 0 : index
    %c0_2 = arith.constant 0 : index
    %1 = vector.load %arg2[%c0_1, %c0_2] : memref<32x128xf32, #tpu.memory_space<vmem>>, vector<32x128xf32>
    %cst = arith.constant dense<0.000000e+00> : vector<128x128xf32>
    %2 = tpu.matmul %0, %1, %cst {dimension_numbers = #tpu.dot_dimension_numbers<[1], [0], [0], [1], [0, 0, 1, 1], [], []>} : vector<128x32xf32>, vector<32x128xf32>, vector<128x128xf32> -> vector<128x128xf32>
    %c0_3 = arith.constant 0 : index
    %c0_4 = arith.constant 0 : index
    %3 = vector.load %arg3[%c0_3, %c0_4] : memref<1x128xf32, #tpu.memory_space<vmem>>, vector<1x128xf32>
    %4 = vector.broadcast %3 : vector<1x128xf32> to vector<128x128xf32>
    %5 = arith.addf %2, %4 : vector<128x128xf32>
    %cst_5 = arith.constant 0.000000e+00 : f32
    %6 = vector.broadcast %cst_5 : f32 to vector<128x128xf32>
    %7 = arith.maximumf %5, %6 : vector<128x128xf32>
    %c0_6 = arith.constant 0 : index
    %c0_7 = arith.constant 0 : index
    %8 = vector.load %arg4[%c0_6, %c0_7] : memref<128x128xf32, #tpu.memory_space<vmem>>, vector<128x128xf32>
    %cst_8 = arith.constant dense<0.000000e+00> : vector<128x128xf32>
    %9 = tpu.matmul %7, %8, %cst_8 {dimension_numbers = #tpu.dot_dimension_numbers<[1], [0], [0], [1], [0, 0, 1, 1], [], []>} : vector<128x128xf32>, vector<128x128xf32>, vector<128x128xf32> -> vector<128x128xf32>
    %c0_9 = arith.constant 0 : index
    %c0_10 = arith.constant 0 : index
    %10 = vector.load %arg5[%c0_9, %c0_10] : memref<1x128xf32, #tpu.memory_space<vmem>>, vector<1x128xf32>
    %11 = vector.broadcast %10 : vector<1x128xf32> to vector<128x128xf32>
    %12 = arith.addf %9, %11 : vector<128x128xf32>
    %cst_11 = arith.constant 0.000000e+00 : f32
    %13 = vector.broadcast %cst_11 : f32 to vector<128x128xf32>
    %14 = arith.maximumf %12, %13 : vector<128x128xf32>
    %c0_12 = arith.constant 0 : index
    %c0_13 = arith.constant 0 : index
    %15 = vector.load %arg6[%c0_12, %c0_13] : memref<16x128xf32, #tpu.memory_space<vmem>>, vector<16x128xf32>
    %cst_14 = arith.constant dense<0.000000e+00> : vector<16x128xf32>
    %16 = tpu.matmul %15, %14, %cst_14 {dimension_numbers = #tpu.dot_dimension_numbers<[1], [1], [0], [0], [0, 0, 1, 0], [], []>} : vector<16x128xf32>, vector<128x128xf32>, vector<16x128xf32> -> vector<16x128xf32>
    %c0_15 = arith.constant 0 : index
    %c0_16 = arith.constant 0 : index
    %17 = vector.load %arg7[%c0_15, %c0_16] : memref<16x1xf32, #tpu.memory_space<vmem>>, vector<16x1xf32>
    %18 = vector.broadcast %17 : vector<16x1xf32> to vector<16x128xf32>
    %19 = arith.addf %16, %18 : vector<16x128xf32>
    %20 = tpu.iota {dimensions = array<i32: 0>} : vector<16x128xi32>
    %c8_i32 = arith.constant 8 : i32
    %21 = vector.broadcast %c8_i32 : i32 to vector<16x128xi32>
    %22 = arith.cmpi slt, %20, %21 : vector<16x128xi32>
    %cst_17 = arith.constant 0xFF800000 : f32
    %23 = vector.broadcast %cst_17 : f32 to vector<16x128xf32>
    %24 = arith.select %22, %19, %23 : vector<16x128xi1>, vector<16x128xf32>
    %cst_18 = arith.constant dense<0xFF800000> : vector<128xf32>
    %25 = vector.multi_reduction <maximumf>, %24, %cst_18 [0] : vector<16x128xf32> to vector<128xf32>
    %26 = vector.shape_cast %25 : vector<128xf32> to vector<1x128xf32>
    %27 = vector.broadcast %26 : vector<1x128xf32> to vector<16x128xf32>
    %28 = arith.cmpf oeq, %24, %27 : vector<16x128xf32>
    %c8_i32_19 = arith.constant 8 : i32
    %29 = vector.broadcast %c8_i32_19 : i32 to vector<16x128xi32>
    %30 = arith.select %28, %20, %29 : vector<16x128xi1>, vector<16x128xi32>
    %cst_20 = arith.constant dense<2147483647> : vector<128xi32>
    %31 = vector.multi_reduction <minsi>, %30, %cst_20 [0] : vector<16x128xi32> to vector<128xi32>
    %32 = vector.shape_cast %31 : vector<128xi32> to vector<1x128xi32>
    %c9_i32 = arith.constant 9 : i32
    %33 = vector.broadcast %c9_i32 : i32 to vector<16x128xi32>
    %34 = arith.cmpi eq, %20, %33 : vector<16x128xi32>
    %35 = arith.sitofp %32 : vector<1x128xi32> to vector<1x128xf32>
    %36 = vector.shape_cast %35 : vector<1x128xf32> to vector<1x128xf32>
    %37 = vector.broadcast %36 : vector<1x128xf32> to vector<16x128xf32>
    %38 = arith.select %34, %37, %19 : vector<16x128xi1>, vector<16x128xf32>
    %c0_21 = arith.constant 0 : index
    %c0_22 = arith.constant 0 : index
    %39 = vector.load %arg8[%c0_21, %c0_22] : memref<16x128xf32, #tpu.memory_space<vmem>>, vector<16x128xf32>
    tpu.vector_store %arg8[%c0_21, %c0_22], %38 {strides = array<i32>} : memref<16x128xf32, #tpu.memory_space<vmem>>, vector<16x128xf32>,
    return
  }
  func.func @transform_0(%arg0: i32) -> (i32, i32) {
    %c0_i32 = arith.constant 0 : i32
    %c0_i32_0 = arith.constant 0 : i32
    return %arg0, %c0_i32 : i32, i32
  }
  func.func @transform_1(%arg0: i32) -> (i32, i32) {
    %c0_i32 = arith.constant 0 : i32
    %c0_i32_0 = arith.constant 0 : i32
    %c0_i32_1 = arith.constant 0 : i32
    return %c0_i32, %c0_i32_0 : i32, i32
  }
  func.func @transform_2(%arg0: i32) -> (i32, i32) {
    %c0_i32 = arith.constant 0 : i32
    %c0_i32_0 = arith.constant 0 : i32
    %c0_i32_1 = arith.constant 0 : i32
    return %c0_i32, %c0_i32_0 : i32, i32
  }
  func.func @transform_3(%arg0: i32) -> (i32, i32) {
    %c0_i32 = arith.constant 0 : i32
    %c0_i32_0 = arith.constant 0 : i32
    %c0_i32_1 = arith.constant 0 : i32
    return %c0_i32, %c0_i32_0 : i32, i32
  }
  func.func @transform_4(%arg0: i32) -> (i32, i32) {
    %c0_i32 = arith.constant 0 : i32
    %c0_i32_0 = arith.constant 0 : i32
    %c0_i32_1 = arith.constant 0 : i32
    return %c0_i32, %c0_i32_0 : i32, i32
  }
  func.func @transform_5(%arg0: i32) -> (i32, i32) {
    %c0_i32 = arith.constant 0 : i32
    %c0_i32_0 = arith.constant 0 : i32
    %c0_i32_1 = arith.constant 0 : i32
    return %c0_i32, %c0_i32_0 : i32, i32
  }
  func.func @transform_6(%arg0: i32) -> (i32, i32) {
    %c0_i32 = arith.constant 0 : i32
    %c0_i32_0 = arith.constant 0 : i32
    %c0_i32_1 = arith.constant 0 : i32
    return %c0_i32, %c0_i32_0 : i32, i32
  }
  func.func @transform_7(%arg0: i32) -> (i32, i32) {
    %c0_i32 = arith.constant 0 : i32
    %c0_i32_0 = arith.constant 0 : i32
    return %c0_i32, %arg0 : i32, i32
  }
}

</mosaic_0001>

<bundles_post_ra>
// kernel: tpu_custom_call.1
= control target key start
LH: loop header
LB: loop body
LE: loop exit
PB: predicated region body
PF: predicated region fallthrough
CT: control target
= control target key end

     0   :  { %vm54_vm0 = vcmask 261120   ;;  %s1026_s0 = inlined_call_operand.vmem [shape: f32[128,32], index: 0, kind: input, shape index: {}]   ;;  %s1027_s1 = inlined_call_operand.vmem [shape: f32[32,128], index: 1, kind: input, shape index: {}]   ;;  %s1028_s2 = inlined_call_operand.vmem [shape: f32[1,128], index: 2, kind: input, shape index: {}]   ;;  %s1029_s3 = inlined_call_operand.vmem [shape: f32[128,128], index: 3, kind: input, shape index: {}]   ;;  %s1030_s4 = inlined_call_operand.vmem [shape: f32[1,128], index: 4, kind: input, shape index: {}]   ;;  %s1031_s5 = inlined_call_operand.vmem [shape: f32[16,128], index: 5, kind: input, shape index: {}]   ;;  %s1032_s6 = inlined_call_operand.vmem [shape: f32[16,1], index: 6, kind: input, shape index: {}]   ;;  %s1033_s7 = inlined_call_operand.hbm [shape: f32[16,128], index: 7, kind: output, shape index: {}]  }
   0x1   :  { %v46_v0 = vld [vmem:[%s1027_s1 + $0x18] sm:$0xff]  ;;  %v45_v1 = vld [vmem:[%s1027_s1 + $0x10] sm:$0xff]  ;;  %v27_v2 = vld [vmem:[%s1026_s0] sm:$0xff] }
   0x2   :  { %678 = vmatprep.subr.mxu1 %v46_v0  ;;  %v44_v3 = vld [vmem:[%s1027_s1 + $0x8] sm:$0xff]  ;;  %686 = vmatprep.mubr.msk.f32.mxu1 %vm54_vm0, %v27_v2  ;;  %v43_v4 = vld [vmem:[%s1027_s1] sm:$0xff]  ;;  %v279_v6 = vld [vmem:[%s1029_s3 + $0x78] sm:$0xff] }
   0x3   :  { %679 = vmatpush3.msra.mxu1 %v46_v0  ;;  %v28_v5 = vld [vmem:[%s1026_s0 + $0x8] sm:$0xff]  ;;  %v29_v7 = vld [vmem:[%s1026_s0 + $0x10] sm:$0xff]  ;;  %v30_v9 = vld [vmem:[%s1026_s0 + $0x18] sm:$0xff] }
   0x4   :  { %680 = vmatprep.subr.mxu1 %v45_v1  ;;  %v278_v8 = vld [vmem:[%s1029_s3 + $0x70] sm:$0xff]  ;;  %v277_v10 = vld [vmem:[%s1029_s3 + $0x68] sm:$0xff]  ;;  %v31_v11 = vld [vmem:[%s1026_s0 + $0x20] sm:$0xff] }
   0x5   :  { %681 = vmatpush3.msra.mxu1 %v45_v1 }
   0x6   :  { %682 = vmatprep.subr.mxu1 %v44_v3 }
   0x7   :  { %683 = vmatpush3.msra.mxu1 %v44_v3 }
   0x8   :  { %684 = vmatprep.subr.mxu1 %v43_v4 }
   0x9   :  { %685 = vmatpush3.msra.mxu1 %v43_v4 }
   0xa   :  { %687 = vmatmul.mubr.msk.f32.vlgmr.msra.gmra.mxu1 %vm54_vm0, %v28_v5  ;;  %710 = vmatprep.subr.mxu1 %v279_v6 }
   0xb   :  { %689 = vmatprep.mubr.msk.f32.mxu1 %vm54_vm0, %v29_v7  ;;  %711 = vmatpush3.msra.mxu1 %v279_v6 }
   0xc   :  { %712 = vmatprep.subr.mxu1 %v278_v8 }
   0xd   :  { %12 = vsyncpa [#allocation3], 0  ;;  %713 = vmatpush3.msra.mxu1 %v278_v8  ;;  %v276_v12 = vld [vmem:[%s1029_s3 + $0x60] sm:$0xff]  ;;  %v32_v13 = vld [vmem:[%s1026_s0 + $0x28] sm:$0xff] }
   0xe   :  { %690 = vmatmul.mubr.msk.f32.gmra.mxu1 %vm54_vm0, %v30_v9  ;;  %714 = vmatprep.subr.mxu1 %v277_v10  ;;  %v275_v14 = vld [vmem:[%s1029_s3 + $0x58] sm:$0xff]  ;;  %v33_v15 = vld [vmem:[%s1026_s0 + $0x30] sm:$0xff]  ;;  %v273_v18 = vld [vmem:[%s1029_s3 + $0x48] sm:$0xff] }
   0xf   :  { %692 = vmatprep.mubr.msk.f32.mxu1 %vm54_vm0, %v31_v11  ;;  %715 = vmatpush3.msra.mxu1 %v277_v10  ;;  %v274_v16 = vld [vmem:[%s1029_s3 + $0x50] sm:$0xff]  ;;  %v34_v17 = vld [vmem:[%s1026_s0 + $0x38] sm:$0xff]  ;;  %v35_v19 = vld [vmem:[%s1026_s0 + $0x40] sm:$0xff] }
  0x10   :  { %716 = vmatprep.subr.mxu1 %v276_v12  ;;  %v272_v20 = vld [vmem:[%s1029_s3 + $0x40] sm:$0xff]  ;;  %v36_v21 = vld [vmem:[%s1026_s0 + $0x48] sm:$0xff]  ;;  %v271_v22 = vld [vmem:[%s1029_s3 + $0x38] sm:$0xff] }
  0x11   :  { %717 = vmatpush3.msra.mxu1 %v276_v12  ;;  %v37_v23 = vld [vmem:[%s1026_s0 + $0x50] sm:$0xff]  ;;  %v38_v25 = vld [vmem:[%s1026_s0 + $0x58] sm:$0xff]  ;;  %v269_v26 = vld [vmem:[%s1029_s3 + $0x28] sm:$0xff] }
  0x12   :  { %693 = vmatmul.mubr.msk.f32.gmra.mxu1 %vm54_vm0, %v32_v13  ;;  %718 = vmatprep.subr.mxu1 %v275_v14  ;;  %v270_v24 = vld [vmem:[%s1029_s3 + $0x30] sm:$0xff]  ;;  %v39_v27 = vld [vmem:[%s1026_s0 + $0x60] sm:$0xff]  ;;  %v40_v29 = vld [vmem:[%s1026_s0 + $0x68] sm:$0xff] }
  0x13   :  { %695 = vmatprep.mubr.msk.f32.mxu1 %vm54_vm0, %v33_v15  ;;  %719 = vmatpush3.msra.mxu1 %v275_v14  ;;  %v268_v28 = vld [vmem:[%s1029_s3 + $0x20] sm:$0xff]  ;;  %v267_v30 = vld [vmem:[%s1029_s3 + $0x18] sm:$0xff]  ;;  %v41_v31 = vld [vmem:[%s1026_s0 + $0x70] sm:$0xff] }
  0x14   :  { %720 = vmatprep.subr.mxu1 %v274_v16  ;;  %v42_v32 = vld [vmem:[%s1026_s0 + $0x78] sm:$0xff]  ;;  %v266_v33 = vld [vmem:[%s1029_s3 + $0x10] sm:$0xff]  ;;  %v265_v34 = vld [vmem:[%s1029_s3 + $0x8] sm:$0xff] }
  0x15   :  { %721 = vmatpush3.msra.mxu1 %v274_v16  ;;  %v264_v35 = vld [vmem:[%s1029_s3] sm:$0xff] }
  0x16   :  { %696 = vmatmul.mubr.msk.f32.gmra.mxu1 %vm54_vm0, %v34_v17  ;;  %722 = vmatprep.subr.mxu1 %v273_v18  ;;  %v589_v36 = vld [vmem:[%s1028_s2] ss:$0 sm:$0xff] }
  0x17   :  { %698 = vmatprep.mubr.msk.f32.mxu1 %vm54_vm0, %v35_v19  ;;  %723 = vmatpush3.msra.mxu1 %v273_v18 }
  0x18   :  { %724 = vmatprep.subr.mxu1 %v272_v20 }
  0x19   :  { %725 = vmatpush3.msra.mxu1 %v272_v20 }
  0x1a   :  { %699 = vmatmul.mubr.msk.f32.gmra.mxu1 %vm54_vm0, %v36_v21  ;;  %726 = vmatprep.subr.mxu1 %v271_v22  ;;  %v448_v21 = vld [vmem:[%s1031_s5] sm:$0xff] }
  0x1b   :  { %701 = vmatprep.mubr.msk.f32.mxu1 %vm54_vm0, %v37_v23  ;;  %727 = vmatpush3.msra.mxu1 %v271_v22  ;;  %v450_v22 = vld [vmem:[%s1032_s6] sm:$0xff]  ;;  %v828_v23 = vmov 0  }
  0x1c   :  { %728 = vmatprep.subr.mxu1 %v270_v24  ;;  %798 = vmatprep.mubr.f32.mxu0 %v448_v21 }
  0x1d   :  { %729 = vmatpush3.msra.mxu1 %v270_v24  ;;  %805 = vset.pattern.permute.xlu0 %v828_v23  ;;  %v451_v24 = vld [vmem:[%s1032_s6 + $0x8] sm:$0xff] }
  0x1e   :  { %702 = vmatmul.mubr.msk.f32.gmra.mxu1 %vm54_vm0, %v38_v25  ;;  %730 = vmatprep.subr.mxu1 %v269_v26 }
  0x1f   :  { %704 = vmatprep.mubr.msk.f32.mxu1 %vm54_vm0, %v39_v27  ;;  %731 = vmatpush3.msra.mxu1 %v269_v26 }
  0x20   :  { %732 = vmatprep.subr.mxu1 %v268_v28  ;;  %454 = vperm.xlu0 %805, %v450_v22  }
  0x21   :  { %733 = vmatpush3.msra.mxu1 %v268_v28 }
  0x22   :  { %705 = vmatmul.mubr.msk.f32.gmra.mxu1 %vm54_vm0, %v40_v29  ;;  %734 = vmatprep.subr.mxu1 %v267_v30 }
  0x23   :  { %707 = vmatprep.mubr.msk.f32.mxu1 %vm54_vm0, %v41_v31  ;;  %735 = vmatpush3.msra.mxu1 %v267_v30 }
  0x24   :  { %736 = vmatprep.subr.mxu1 %v266_v33  ;;  %459 = vperm.xlu0 %805, %v451_v24  }
  0x25   :  { %737 = vmatpush3.msra.mxu1 %v266_v33 }
  0x26   :  { %708 = vmatmul.mubr.msk.f32.gmra.mxu1 %vm54_vm0, %v42_v32  ;;  %738 = vmatprep.subr.mxu1 %v265_v34 }
  0x27   :  { %739 = vmatpush3.msra.mxu1 %v265_v34 }
  0x28   :  { %740 = vmatprep.subr.mxu1 %v264_v35 }
  0x29   :  { %741 = vmatpush3.msra.mxu1 %v264_v35 }
  0xca   :  { %v688_v37 = vpop.f32.mrf.mxu1 }
  0xcb   :  { %v175_v38 = vadd.f32 %v688_v37, %v589_v36 }
  0xcc   :  { %v169_v39 = vpop.f32.mrf.mxu1 }
  0xcd   :  { %v170_v40 = vadd.f32 %v589_v36, %v169_v39  ;;  %v249_v43 = vmax.f32 %v175_v38, 0.0  ;;  %v606_v39 = vld [vmem:[%s1030_s4] ss:$0 sm:$0xff] }
  0xce   :  { %v691_v41 = vpop.f32.mrf.mxu1 }
  0xcf   :  { %v248_v42 = vmax.f32 %v170_v40, 0.0  ;;  %v185_v44 = vadd.f32 %v691_v41, %v589_v36 }
  0xd0   :  { %v179_v45 = vpop.f32.mrf.mxu1 }
  0xd1   :  { %v180_v46 = vadd.f32 %v589_v36, %v179_v45  ;;  %742 = vmatprep.mubr.f32.mxu1 %v248_v42  ;;  %v251_v49 = vmax.f32 %v185_v44, 0.0 }
  0xd2   :  { %v694_v47 = vpop.f32.mrf.mxu1  ;;  %743 = vmatmul.mubr.f32.vlgmr.msra.gmra.mxu1 %v249_v43 }
  0xd3   :  { %v250_v48 = vmax.f32 %v180_v46, 0.0  ;;  %v195_v50 = vadd.f32 %v694_v47, %v589_v36 }
  0xd4   :  { %v189_v51 = vpop.f32.mrf.mxu1 }
  0xd5   :  { %v190_v52 = vadd.f32 %v589_v36, %v189_v51  ;;  %745 = vmatprep.mubr.f32.mxu1 %v250_v48  ;;  %v253_v55 = vmax.f32 %v195_v50, 0.0 }
  0xd6   :  { %v697_v53 = vpop.f32.mrf.mxu1  ;;  %746 = vmatmul.mubr.f32.gmra.mxu1 %v251_v49 }
  0xd7   :  { %v252_v54 = vmax.f32 %v190_v52, 0.0  ;;  %v205_v56 = vadd.f32 %v697_v53, %v589_v36 }
  0xd8   :  { %v199_v57 = vpop.f32.mrf.mxu1 }
  0xd9   :  { %v200_v58 = vadd.f32 %v589_v36, %v199_v57  ;;  %748 = vmatprep.mubr.f32.mxu1 %v252_v54  ;;  %v255_v61 = vmax.f32 %v205_v56, 0.0 }
  0xda   :  { %v700_v59 = vpop.f32.mrf.mxu1  ;;  %749 = vmatmul.mubr.f32.gmra.mxu1 %v253_v55 }
  0xdb   :  { %v254_v60 = vmax.f32 %v200_v58, 0.0  ;;  %v215_v62 = vadd.f32 %v700_v59, %v589_v36 }
  0xdc   :  { %v209_v63 = vpop.f32.mrf.mxu1 }
  0xdd   :  { %v210_v0 = vadd.f32 %v589_v36, %v209_v63  ;;  %751 = vmatprep.mubr.f32.mxu1 %v254_v60  ;;  %v257_v3 = vmax.f32 %v215_v62, 0.0 }
  0xde   :  { %v703_v1 = vpop.f32.mrf.mxu1  ;;  %752 = vmatmul.mubr.f32.gmra.mxu1 %v255_v61 }
  0xdf   :  { %v256_v2 = vmax.f32 %v210_v0, 0.0  ;;  %v225_v4 = vadd.f32 %v703_v1, %v589_v36 }
  0xe0   :  { %v219_v5 = vpop.f32.mrf.mxu1 }
  0xe1   :  { %v220_v6 = vadd.f32 %v589_v36, %v219_v5  ;;  %754 = vmatprep.mubr.f32.mxu1 %v256_v2  ;;  %v259_v9 = vmax.f32 %v225_v4, 0.0 }
  0xe2   :  { %v706_v7 = vpop.f32.mrf.mxu1  ;;  %755 = vmatmul.mubr.f32.gmra.mxu1 %v257_v3 }
  0xe3   :  { %v258_v8 = vmax.f32 %v220_v6, 0.0  ;;  %v235_v10 = vadd.f32 %v706_v7, %v589_v36 }
  0xe4   :  { %v229_v11 = vpop.f32.mrf.mxu1 }
  0xe5   :  { %v230_v12 = vadd.f32 %v589_v36, %v229_v11  ;;  %757 = vmatprep.mubr.f32.mxu1 %v258_v8  ;;  %v261_v15 = vmax.f32 %v235_v10, 0.0  ;;  %v449_v10 = vld [vmem:[%s1031_s5 + $0x8] sm:$0xff]  ;;  %s829_s5 = smov [#allocation2]  }
  0xe6   :  { %v709_v13 = vpop.f32.mrf.mxu1  ;;  %758 = vmatmul.mubr.f32.gmra.mxu1 %v259_v9  ;;  %s578_s8 = sshll.u32 %s829_s5, 4  ;;  %s579_s8 = int_to_ptr.vmem [resolvable:$true] %s578_s8 }
  0xe7   :  { %v260_v14 = vmax.f32 %v230_v12, 0.0  ;;  %v245_v16 = vadd.f32 %v709_v13, %v589_v36  ;;  %v455_v12 = vpop.permute.xlu0 %454  ;;  %s806_s9 = scalar_lea.vmem %s579_s8, 256  ;;  %p811_p1 = scmp.lt.s32.totalorder %s579_s8, %s579_s8 }
  0xe8   :  { %v239_v17 = vpop.f32.mrf.mxu1  ;;  %p807_p0 = scmp.ne.s32.totalorder %s579_s8, %s806_s9  ;;  %p812_p2 = scmp.lt.s32.totalorder %s806_s9, %s806_s9 }
  0xe9   :  { %v240_v18 = vadd.f32 %v589_v36, %v239_v17  ;;  %760 = vmatprep.mubr.f32.mxu1 %v260_v14  ;;  %v263_v20 = vmax.f32 %v245_v16, 0.0  ;;  %v537_v16 = vlaneseq }
  0xea   :  { %761 = vmatmul.mubr.f32.gmra.mxu1 %v261_v15  ;;  %p813_p3 = por %p812_p2, %p811_p1 }
  0xeb   :  { %v262_v19 = vmax.f32 %v240_v18, 0.0 }
  0xec   :  { %p814_p4 = pnand %p813_p3, %p807_p0 }
  0xed   :  { %763 = vmatprep.mubr.f32.mxu1 %v262_v19  ;;  %v538_v19 = vshrl.u32 %v537_v16, 7 }
  0xee   :  { %764 = vmatmul.mubr.f32.gmra.mxu1 %v263_v20 }
  0xef   :  { %v539_v22 = vadd.s32 8, %v538_v19 }
  0xf1   :  { %vm567_vm7 = vcmp.eq.s32.totalorder %v539_v22, 9 }
 0x192   :  { %v1008_v25 = vpop.f32.mrf.mxu1 }
 0x193   :  { %v359_v5 = vadd.f32 %v1008_v25, %v606_v39 }
 0x194   :  { %v1010_v26 = vpop.f32.mrf.mxu1 }
 0x195   :  { %v433_v7 = vmax.f32 %v359_v5, 0.0  ;;  %v354_v8 = vadd.f32 %v606_v39, %v1010_v26 }
 0x196   :  { %v747_v27 = vpop.f32.mrf.mxu1 }
 0x197   :  { %v369_v1 = vadd.f32 %v747_v27, %v606_v39  ;;  %v432_v9 = vmax.f32 %v354_v8, 0.0 }
 0x198   :  { %v1012_v28 = vpop.f32.mrf.mxu1 }
 0x199   :  { %v435_v3 = vmax.f32 %v369_v1, 0.0  ;;  %v364_v4 = vadd.f32 %v606_v39, %v1012_v28 }
 0x19a   :  { %v750_v29 = vpop.f32.mrf.mxu1 }
 0x19b   :  { %v379_v61 = vadd.f32 %v750_v29, %v606_v39  ;;  %v434_v6 = vmax.f32 %v364_v4, 0.0 }
 0x19c   :  { %v373_v30 = vpop.f32.mrf.mxu1 }
 0x19d   :  { %v437_v63 = vmax.f32 %v379_v61, 0.0  ;;  %v374_v0 = vadd.f32 %v606_v39, %v373_v30 }
 0x19e   :  { %v753_v31 = vpop.f32.mrf.mxu1 }
 0x19f   :  { %v389_v57 = vadd.f32 %v753_v31, %v606_v39  ;;  %v436_v2 = vmax.f32 %v374_v0, 0.0 }
 0x1a0   :  { %v383_v32 = vpop.f32.mrf.mxu1 }
 0x1a1   :  { %v439_v59 = vmax.f32 %v389_v57, 0.0  ;;  %v384_v60 = vadd.f32 %v606_v39, %v383_v32  ;;  %v460_v32 = vpop.permute.xlu0 %459 }
 0x1a2   :  { %v756_v33 = vpop.f32.mrf.mxu1 }
 0x1a3   :  { %v399_v53 = vadd.f32 %v756_v33, %v606_v39  ;;  %v438_v62 = vmax.f32 %v384_v60, 0.0 }
 0x1a4   :  { %v393_v34 = vpop.f32.mrf.mxu1 }
 0x1a5   :  { %v441_v55 = vmax.f32 %v399_v53, 0.0  ;;  %v394_v56 = vadd.f32 %v606_v39, %v393_v34 }
 0x1a6   :  { %v759_v35 = vpop.f32.mrf.mxu1 }
 0x1a7   :  { %v409_v49 = vadd.f32 %v759_v35, %v606_v39  ;;  %v440_v58 = vmax.f32 %v394_v56, 0.0 }
 0x1a8   :  { %v403_v36 = vpop.f32.mrf.mxu1 }
 0x1a9   :  { %v443_v51 = vmax.f32 %v409_v49, 0.0  ;;  %v404_v52 = vadd.f32 %v606_v39, %v403_v36 }
 0x1aa   :  { %v762_v37 = vpop.f32.mrf.mxu1 }
 0x1ab   :  { %v419_v45 = vadd.f32 %v762_v37, %v606_v39  ;;  %v442_v54 = vmax.f32 %v404_v52, 0.0 }
 0x1ac   :  { %v413_v38 = vpop.f32.mrf.mxu1 }
 0x1ad   :  { %v445_v47 = vmax.f32 %v419_v45, 0.0  ;;  %v414_v48 = vadd.f32 %v606_v39, %v413_v38 }
 0x1ae   :  { %v765_v40 = vpop.f32.mrf.mxu1 }
 0x1af   :  { %v429_v41 = vadd.f32 %v765_v40, %v606_v39  ;;  %v444_v50 = vmax.f32 %v414_v48, 0.0 }
 0x1b0   :  { %v423_v42 = vpop.f32.mrf.mxu1 }
 0x1b1   :  { %v447_v43 = vmax.f32 %v429_v41, 0.0  ;;  %v424_v44 = vadd.f32 %v606_v39, %v423_v42 }
 0x1b3   :  { %v446_v46 = vmax.f32 %v424_v44, 0.0  ;;  %766 = vmatprep.subr.mxu0 %v447_v43 }
 0x1b4   :  { %767 = vmatpush3.xpose.msra.mxu0 %v447_v43 }
 0x1b5   :  { %768 = vmatprep.subr.mxu0 %v446_v46 }
 0x1b8   :  { %769 = vmatpush3.xpose.msra.mxu0 %v446_v46 }
 0x1b9   :  { %770 = vmatprep.subr.mxu0 %v445_v47 }
 0x1bc   :  { %771 = vmatpush3.xpose.msra.mxu0 %v445_v47 }
 0x1bd   :  { %772 = vmatprep.subr.mxu0 %v444_v50 }
 0x1c0   :  { %773 = vmatpush3.xpose.msra.mxu0 %v444_v50 }
 0x1c1   :  { %774 = vmatprep.subr.mxu0 %v443_v51 }
 0x1c4   :  { %775 = vmatpush3.xpose.msra.mxu0 %v443_v51 }
 0x1c5   :  { %776 = vmatprep.subr.mxu0 %v442_v54 }
 0x1c8   :  { %777 = vmatpush3.xpose.msra.mxu0 %v442_v54 }
 0x1c9   :  { %778 = vmatprep.subr.mxu0 %v441_v55 }
 0x1cc   :  { %779 = vmatpush3.xpose.msra.mxu0 %v441_v55 }
 0x1cd   :  { %780 = vmatprep.subr.mxu0 %v440_v58 }
 0x1d0   :  { %781 = vmatpush3.xpose.msra.mxu0 %v440_v58 }
 0x1d1   :  { %782 = vmatprep.subr.mxu0 %v439_v59 }
 0x1d4   :  { %783 = vmatpush3.xpose.msra.mxu0 %v439_v59 }
 0x1d5   :  { %784 = vmatprep.subr.mxu0 %v438_v62 }
 0x1d8   :  { %785 = vmatpush3.xpose.msra.mxu0 %v438_v62 }
 0x1d9   :  { %786 = vmatprep.subr.mxu0 %v437_v63 }
 0x1dc   :  { %787 = vmatpush3.xpose.msra.mxu0 %v437_v63 }
 0x1dd   :  { %788 = vmatprep.subr.mxu0 %v436_v2 }
 0x1e0   :  { %789 = vmatpush3.xpose.msra.mxu0 %v436_v2 }
 0x1e1   :  { %790 = vmatprep.subr.mxu0 %v435_v3 }
 0x1e4   :  { %791 = vmatpush3.xpose.msra.mxu0 %v435_v3 }
 0x1e5   :  { %792 = vmatprep.subr.mxu0 %v434_v6 }
 0x1e8   :  { %793 = vmatpush3.xpose.msra.mxu0 %v434_v6 }
 0x1e9   :  { %794 = vmatprep.subr.mxu0 %v433_v7 }
 0x1ec   :  { %795 = vmatpush3.xpose.msra.mxu0 %v433_v7 }
 0x1ed   :  { %796 = vmatprep.subr.mxu0 %v432_v9 }
 0x1f0   :  { %797 = vmatpush3.xpose.msra.mxu0 %v432_v9 }
 0x1f3   :  { %799 = vmatmul.mubr.f32.vlgmr.msra.gmra.mxu0 %v449_v10 }
 0x2b3   :  { %v800_v11 = vpop.f32.mrf.mxu0 }
 0x2b4   :  { %v534_v34 = vadd.f32 %v800_v11, %v460_v32 }
 0x2b5   :  { %v528_v13 = vpop.f32.mrf.mxu0 }
 0x2b6   :  { %v529_v14 = vadd.f32 %v528_v13, %v455_v12 }
 0x2b8   :  { %v545_v15 = vrot.slane %v529_v14, 4  ;;  %571 = vst [vmem:[#allocation2] sm:$0xff] %v529_v14 }
 0x2ba   :  { %v546_v17 = vmax.f32 %v529_v14, %v545_v15 }
 0x2bc   :  { %v547_v18 = vrot.slane %v546_v17, 2 }
 0x2be   :  { %v548_v20 = vmax.f32 %v546_v17, %v547_v18 }
 0x2c0   :  { %v549_v21 = vrot.slane %v548_v20, 1 }
 0x2c2   :  { %v550_v23 = vmax.f32 %v548_v20, %v549_v21 }
 0x2c4   :  { %vm551_vm1 = vcmp.eq.f32.partialorder %v529_v14, %v550_v23  ;;  %vm607_vm2 = vcmp.eq.f32.partialorder %v550_v23, -inf }
 0x2c5   :  { %v553_v24 = vsel %vm551_vm1, %v538_v19, 8  ;;  %v554_v25 = vsel %vm607_vm2, %v539_v22, 8 }
 0x2c6   :  { %vm555_vm3 = vcmp.lt.s32.totalorder %v553_v24, %v554_v25 }
 0x2c7   :  { %v556_v26 = vsel %vm555_vm3, %v553_v24, %v554_v25 }
 0x2c8   :  { %v557_v27 = vrot.slane %v556_v26, 4 }
 0x2ca   :  { %vm558_vm4 = vcmp.lt.s32.totalorder %v556_v26, %v557_v27 }
 0x2cb   :  { %v559_v28 = vsel %vm558_vm4, %v556_v26, %v557_v27 }
 0x2cc   :  { %v560_v29 = vrot.slane %v559_v28, 2 }
 0x2ce   :  { %vm561_vm5 = vcmp.lt.s32.totalorder %v559_v28, %v560_v29 }
 0x2cf   :  { %v562_v30 = vsel %vm561_vm5, %v559_v28, %v560_v29 }
 0x2d0   :  { %v563_v31 = vrot.slane %v562_v30, 1 }
 0x2d2   :  { %vm564_vm6 = vcmp.lt.s32.totalorder %v562_v30, %v563_v31 }
 0x2d3   :  { %v565_v33 = vsel %vm564_vm6, %v562_v30, %v563_v31 }
 0x2d4   :  { %v568_v35 = vcvt.s32.f32 %v565_v33 }
 0x2d6   :  { %v570_v36 = vsel %vm567_vm7, %v568_v35, %v534_v34 }
 0x2d7   :  { %572 = vst [vmem:[#allocation2 + $0x8] sm:$0xff] %v570_v36 }
 0x2d8   :  { %817 = shalt.err (!%p814_p4)
}
 0x2d9   :  { %s830_s10 = smov 128   ;;  %s831_s11 = smov 8  }
 0x2da   :  { %584 = dma.vmem_to_hbm [thread:$0]  %s579_s8, 256, %s1033_s7, [#allocation3], %s830_s10, %s830_s10, %s831_s11  }
 0x2db   :  { %826 = dma.done.wait [#allocation3], 256  }
 0x2dc   :  { %827 = vsyncadd [#allocation3], 4294967040 }
 0x2dd   :  { %588 = vsyncpa [#allocation3], 1 }

</bundles_post_ra>
